<compile_context>
chip_gen: v6e
topology: v6e:2x2x1
jax: 0.10.0
libtpu: 0.0.40
codegen_flags: <defaults>
</compile_context>

<pallas_src>
import jax
import jax.numpy as jnp
from jax.experimental import pallas as pl
from jax.experimental.pallas import tpu as pltpu


def mlp_kernel(x_ref,
               w1_ref, b1_ref,
               w2_ref, b2_ref,
               w3_ref, b3_ref,
               w4_ref, b4_ref,
               out_ref):
    # x tile: (TM, F) f32 straight from HBM; cast to bf16 here (cheap VPU work)
    # so the dominant HBM stream stays a single f32 read while the layer-1
    # matmul runs in bf16 on the MXU with f32 accumulation.
    x = x_ref[...].astype(jnp.bfloat16)                       # (TM, F)

    # Layer 1, transposed: h1 = W1 @ x^T -> (7, TM).  NT dot_general keeps the
    # batch on the lane axis (lane-dense intermediates) and needs no transpose
    # of the big x tile.
    h = jax.lax.dot_general(
        w1_ref[...], x,
        dimension_numbers=(((1,), (1,)), ((), ())),
        preferred_element_type=jnp.float32)                   # (7, TM) f32
    h = jnp.maximum(h + b1_ref[...], 0.0)                     # bias (7,1) broadcasts over lanes

    # Tiny inner layers (7->6->3->1) stay in f32; weights are (out, in) so
    # these are plain row-major matmuls with the big operand on the lane axis.
    h = jnp.dot(w2_ref[...], h, preferred_element_type=jnp.float32) + b2_ref[...]
    h = jnp.maximum(h, 0.0)
    h = jnp.dot(w3_ref[...], h, preferred_element_type=jnp.float32) + b3_ref[...]
    h = jnp.maximum(h, 0.0)
    out = jnp.dot(w4_ref[...], h, preferred_element_type=jnp.float32) + b4_ref[...]  # (1, TM)

    # Lane-dense store: full-lane unmasked stores, contiguous writeback DMA.
    out_ref[...] = out.astype(out_ref.dtype)


def reference_forward(x, params, *, precision=None):
    """Pure-JAX reference. Weights are PyTorch-oriented (out, in), biases (out, 1)."""
    h = jnp.maximum(jnp.dot(x, params["w1"].T, precision=precision) + params["b1"].T, 0.0)
    h = jnp.maximum(jnp.dot(h, params["w2"].T, precision=precision) + params["b2"].T, 0.0)
    h = jnp.maximum(jnp.dot(h, params["w3"].T, precision=precision) + params["b3"].T, 0.0)
    return jnp.dot(h, params["w4"].T, precision=precision) + params["b4"].T


def mlp_classifier_forward(x, params, *, tile_m=16384):
    """MLPClassifier forward.

    x:      (B, num_features) float32, row-major (same as nn.Linear input).
    params: dict of PyTorch-oriented weights w_i (out, in) f32 and biases b_i (out, 1) f32.
    Returns (B, 1) float32 logits.
    """
    B, F = x.shape

    # Lane-dense output blocks require tile_m % 128 == 0; clamp to the batch so
    # small batches don't pay for a huge, mostly-padded tile.
    tile_m = min(int(tile_m), pl.cdiv(B, 128) * 128)
    tile_m = max(128, (tile_m // 128) * 128)
    num_tiles = pl.cdiv(B, tile_m)
    b_pad = num_tiles * tile_m

    # Only the tiny layer-1 weight is pre-cast to bf16; x is passed through as
    # f32 (cast per-tile in-kernel), so there is no extra HBM pass over the
    # batch.  The ragged last tile is handled by the pipeline's partial block
    # reads (garbage rows are sliced off below), not by padding the array.
    w1 = params["w1"].astype(jnp.bfloat16)     # (7, F)
    b1 = params["b1"]                          # (7, 1)
    w2, b2 = params["w2"], params["b2"]        # (6, 7), (6, 1)
    w3, b3 = params["w3"], params["b3"]        # (3, 6), (3, 1)
    w4, b4 = params["w4"], params["b4"]        # (1, 3), (1, 1)

    def const_spec(shape):
        # Whole array, same block every grid step -> stays VMEM-resident.
        return pl.BlockSpec(shape, lambda i: (0, 0))

    param_args = (w1, b1, w2, b2, w3, b3, w4, b4)
    param_bytes = sum(int(a.size) * a.dtype.itemsize for a in param_args)
    cost = pl.CostEstimate(
        flops=2 * b_pad * (F * 7 + 7 * 6 + 6 * 3 + 3 * 1),
        transcendentals=0,
        bytes_accessed=b_pad * F * 4 + b_pad * 4 + param_bytes,
    )

    out = pl.pallas_call(
        mlp_kernel,
        out_shape=jax.ShapeDtypeStruct((1, b_pad), jnp.float32),
        grid=(num_tiles,),
        in_specs=[
            pl.BlockSpec((tile_m, F), lambda i: (i, 0)),      # x: batch-tiled, double-buffered
            const_spec((7, F)), const_spec((7, 1)),
            const_spec((6, 7)), const_spec((6, 1)),
            const_spec((3, 6)), const_spec((3, 1)),
            const_spec((1, 3)), const_spec((1, 1)),
        ],
        out_specs=pl.BlockSpec((1, tile_m), lambda i: (0, i)),  # lane-dense output slab
        compiler_params=pltpu.CompilerParams(
            # Batch tiles are independent.  On v7x, replacing this with
            # pltpu.CORE_PARALLEL shards tiles across the 2 TensorCores.
            dimension_semantics=("parallel",),
            # 2 x-buffers at tile_m=16384 (lane-padded) + f32 temporaries fit
            # comfortably; 48 MiB leaves >16 MiB headroom on v7x's 64 MiB VMEM.
            vmem_limit_bytes=48 * 1024 * 1024,
        ),
        cost_estimate=cost,
    )(x, *param_args)

    # (1, b_pad) lane-dense slab -> (b_pad, 1), drop the padded tail rows.
    return out.reshape(b_pad, 1)[:B]


def init_params(key, num_features):
    """PyTorch Linear-style init: U(-1/sqrt(fan_in), 1/sqrt(fan_in)).
    Weights stored as (out_features, in_features); biases as (out_features, 1)."""
    dims = [(num_features, 7), (7, 6), (6, 3), (3, 1)]
    params = {}
    keys = jax.random.split(key, 2 * len(dims))
    for i, (fan_in, fan_out) in enumerate(dims):
        bound = 1.0 / jnp.sqrt(jnp.float32(fan_in))
        w = jax.random.uniform(keys[2 * i], (fan_out, fan_in),
                               minval=-bound, maxval=bound, dtype=jnp.float32)
        b = jax.random.uniform(keys[2 * i + 1], (fan_out, 1),
                               minval=-bound, maxval=bound, dtype=jnp.float32)
        params[f"w{i + 1}"] = w
        params[f"b{i + 1}"] = b
    return params


if __name__ == "__main__":
    key = jax.random.PRNGKey(0)
    k_x, k_p = jax.random.split(key)

    batch = 2000          # deliberately not a tile multiple -> exercises the ragged last tile
    num_features = 32     # small synthetic feature count

    x = jax.random.normal(k_x, (batch, num_features), dtype=jnp.float32)
    params = init_params(k_p, num_features)

    # Small tile in the demo so several grid steps (and the ragged tail) run;
    # the production default is tile_m=16384.
    out = mlp_classifier_forward(x, params, tile_m=512)
    out = jax.block_until_ready(out)
    assert out.shape == (batch, 1)

    # Strict check vs. a reference that rounds x / w1 to bf16 exactly like the
    # kernel (accumulation stays f32; HIGHEST precision so XLA adds no extra
    # bf16 rounding of its own).
    hp = jax.lax.Precision.HIGHEST
    x_rt = x.astype(jnp.bfloat16).astype(jnp.float32)
    p_rt = dict(params)
    p_rt["w1"] = params["w1"].astype(jnp.bfloat16).astype(jnp.float32)
    ref_bf16 = reference_forward(x_rt, p_rt, precision=hp)
    assert jnp.allclose(out, ref_bf16, atol=1e-2, rtol=1e-2), \
        float(jnp.max(jnp.abs(out - ref_bf16)))

    # Loose check vs. the pure-f32 reference (difference is bf16 rounding of x/w1 only).
    ref_f32 = reference_forward(x, params, precision=hp)
    assert jnp.allclose(out, ref_f32, atol=5e-2, rtol=5e-2)

    print("KERNEL_OK")
</pallas_src>

<mosaic_0001>
module attributes {stable_mosaic.version = 11 : i64} {
  func.func @mlp_kernel(%arg0: i32, %arg1: memref<512x32xf32, #tpu.memory_space<vmem>>, %arg2: memref<7x32xbf16, #tpu.memory_space<vmem>>, %arg3: memref<7x1xf32, #tpu.memory_space<vmem>>, %arg4: memref<6x7xf32, #tpu.memory_space<vmem>>, %arg5: memref<6x1xf32, #tpu.memory_space<vmem>>, %arg6: memref<3x6xf32, #tpu.memory_space<vmem>>, %arg7: memref<3x1xf32, #tpu.memory_space<vmem>>, %arg8: memref<1x3xf32, #tpu.memory_space<vmem>>, %arg9: memref<1x1xf32, #tpu.memory_space<vmem>>, %arg10: memref<1x512xf32, #tpu.memory_space<vmem>>) attributes {dimension_semantics = [#tpu.dimension_semantics<parallel>], iteration_bounds = array<i64: 4>, scalar_prefetch = 0 : i64, scratch_operands = 0 : i64, tpu.core_type = #tpu.core_type<tc>, window_params = [{transform_indices = @transform_0, window_bounds = array<i64: 512, 32>}, {pipeline_mode = #tpu.pipeline_mode<synchronous>, transform_indices = @transform_1, window_bounds = array<i64: 7, 32>}, {pipeline_mode = #tpu.pipeline_mode<synchronous>, transform_indices = @transform_2, window_bounds = array<i64: 7, 1>}, {pipeline_mode = #tpu.pipeline_mode<synchronous>, transform_indices = @transform_3, window_bounds = array<i64: 6, 7>}, {pipeline_mode = #tpu.pipeline_mode<synchronous>, transform_indices = @transform_4, window_bounds = array<i64: 6, 1>}, {pipeline_mode = #tpu.pipeline_mode<synchronous>, transform_indices = @transform_5, window_bounds = array<i64: 3, 6>}, {pipeline_mode = #tpu.pipeline_mode<synchronous>, transform_indices = @transform_6, window_bounds = array<i64: 3, 1>}, {pipeline_mode = #tpu.pipeline_mode<synchronous>, transform_indices = @transform_7, window_bounds = array<i64: 1, 3>}, {pipeline_mode = #tpu.pipeline_mode<synchronous>, transform_indices = @transform_8, window_bounds = array<i64: 1, 1>}, {transform_indices = @transform_9, window_bounds = array<i64: 1, 512>}]} {
    %c0 = arith.constant 0 : index
    %c0_0 = arith.constant 0 : index
    %0 = vector.load %arg1[%c0, %c0_0] : memref<512x32xf32, #tpu.memory_space<vmem>>, vector<512x32xf32>
    %1 = arith.truncf %0 : vector<512x32xf32> to vector<512x32xbf16>
    %c0_1 = arith.constant 0 : index
    %c0_2 = arith.constant 0 : index
    %2 = vector.load %arg2[%c0_1, %c0_2] : memref<7x32xbf16, #tpu.memory_space<vmem>>, vector<7x32xbf16>
    %cst = arith.constant dense<0.000000e+00> : vector<7x512xf32>
    %3 = tpu.matmul %2, %1, %cst {dimension_numbers = #tpu.dot_dimension_numbers<[1], [1], [0], [0], [0, 0, 1, 0], [], []>} : vector<7x32xbf16>, vector<512x32xbf16>, vector<7x512xf32> -> vector<7x512xf32>
    %c0_3 = arith.constant 0 : index
    %c0_4 = arith.constant 0 : index
    %4 = vector.load %arg3[%c0_3, %c0_4] : memref<7x1xf32, #tpu.memory_space<vmem>>, vector<7x1xf32>
    %5 = vector.broadcast %4 : vector<7x1xf32> to vector<7x512xf32>
    %6 = arith.addf %3, %5 : vector<7x512xf32>
    %cst_5 = arith.constant 0.000000e+00 : f32
    %7 = vector.broadcast %cst_5 : f32 to vector<7x512xf32>
    %8 = arith.maximumf %6, %7 : vector<7x512xf32>
    %c0_6 = arith.constant 0 : index
    %c0_7 = arith.constant 0 : index
    %9 = vector.load %arg4[%c0_6, %c0_7] : memref<6x7xf32, #tpu.memory_space<vmem>>, vector<6x7xf32>
    %cst_8 = arith.constant dense<0.000000e+00> : vector<6x512xf32>
    %10 = tpu.matmul %9, %8, %cst_8 {dimension_numbers = #tpu.dot_dimension_numbers<[1], [0], [0], [1], [0, 0, 1, 1], [], []>} : vector<6x7xf32>, vector<7x512xf32>, vector<6x512xf32> -> vector<6x512xf32>
    %c0_9 = arith.constant 0 : index
    %c0_10 = arith.constant 0 : index
    %11 = vector.load %arg5[%c0_9, %c0_10] : memref<6x1xf32, #tpu.memory_space<vmem>>, vector<6x1xf32>
    %12 = vector.broadcast %11 : vector<6x1xf32> to vector<6x512xf32>
    %13 = arith.addf %10, %12 : vector<6x512xf32>
    %cst_11 = arith.constant 0.000000e+00 : f32
    %14 = vector.broadcast %cst_11 : f32 to vector<6x512xf32>
    %15 = arith.maximumf %13, %14 : vector<6x512xf32>
    %c0_12 = arith.constant 0 : index
    %c0_13 = arith.constant 0 : index
    %16 = vector.load %arg6[%c0_12, %c0_13] : memref<3x6xf32, #tpu.memory_space<vmem>>, vector<3x6xf32>
    %cst_14 = arith.constant dense<0.000000e+00> : vector<3x512xf32>
    %17 = tpu.matmul %16, %15, %cst_14 {dimension_numbers = #tpu.dot_dimension_numbers<[1], [0], [0], [1], [0, 0, 1, 1], [], []>} : vector<3x6xf32>, vector<6x512xf32>, vector<3x512xf32> -> vector<3x512xf32>
    %c0_15 = arith.constant 0 : index
    %c0_16 = arith.constant 0 : index
    %18 = vector.load %arg7[%c0_15, %c0_16] : memref<3x1xf32, #tpu.memory_space<vmem>>, vector<3x1xf32>
    %19 = vector.broadcast %18 : vector<3x1xf32> to vector<3x512xf32>
    %20 = arith.addf %17, %19 : vector<3x512xf32>
    %cst_17 = arith.constant 0.000000e+00 : f32
    %21 = vector.broadcast %cst_17 : f32 to vector<3x512xf32>
    %22 = arith.maximumf %20, %21 : vector<3x512xf32>
    %c0_18 = arith.constant 0 : index
    %c0_19 = arith.constant 0 : index
    %23 = vector.load %arg8[%c0_18, %c0_19] : memref<1x3xf32, #tpu.memory_space<vmem>>, vector<1x3xf32>
    %cst_20 = arith.constant dense<0.000000e+00> : vector<1x512xf32>
    %24 = tpu.matmul %23, %22, %cst_20 {dimension_numbers = #tpu.dot_dimension_numbers<[1], [0], [0], [1], [0, 0, 1, 1], [], []>} : vector<1x3xf32>, vector<3x512xf32>, vector<1x512xf32> -> vector<1x512xf32>
    %c0_21 = arith.constant 0 : index
    %c0_22 = arith.constant 0 : index
    %25 = vector.load %arg9[%c0_21, %c0_22] : memref<1x1xf32, #tpu.memory_space<vmem>>, vector<1x1xf32>
    %26 = vector.broadcast %25 : vector<1x1xf32> to vector<1x512xf32>
    %27 = arith.addf %24, %26 : vector<1x512xf32>
    %c0_23 = arith.constant 0 : index
    %c0_24 = arith.constant 0 : index
    %28 = vector.load %arg10[%c0_23, %c0_24] : memref<1x512xf32, #tpu.memory_space<vmem>>, vector<1x512xf32>
    tpu.vector_store %arg10[%c0_23, %c0_24], %27 {strides = array<i32>} : memref<1x512xf32, #tpu.memory_space<vmem>>, vector<1x512xf32>,
    return
  }
  func.func @transform_0(%arg0: i32) -> (i32, i32) {
    %c0_i32 = arith.constant 0 : i32
    %c0_i32_0 = arith.constant 0 : i32
    return %arg0, %c0_i32 : i32, i32
  }
  func.func @transform_1(%arg0: i32) -> (i32, i32) {
    %c0_i32 = arith.constant 0 : i32
    %c0_i32_0 = arith.constant 0 : i32
    %c0_i32_1 = arith.constant 0 : i32
    return %c0_i32, %c0_i32_0 : i32, i32
  }
  func.func @transform_2(%arg0: i32) -> (i32, i32) {
    %c0_i32 = arith.constant 0 : i32
    %c0_i32_0 = arith.constant 0 : i32
    %c0_i32_1 = arith.constant 0 : i32
    return %c0_i32, %c0_i32_0 : i32, i32
  }
  func.func @transform_3(%arg0: i32) -> (i32, i32) {
    %c0_i32 = arith.constant 0 : i32
    %c0_i32_0 = arith.constant 0 : i32
    %c0_i32_1 = arith.constant 0 : i32
    return %c0_i32, %c0_i32_0 : i32, i32
  }
  func.func @transform_4(%arg0: i32) -> (i32, i32) {
    %c0_i32 = arith.constant 0 : i32
    %c0_i32_0 = arith.constant 0 : i32
    %c0_i32_1 = arith.constant 0 : i32
    return %c0_i32, %c0_i32_0 : i32, i32
  }
  func.func @transform_5(%arg0: i32) -> (i32, i32) {
    %c0_i32 = arith.constant 0 : i32
    %c0_i32_0 = arith.constant 0 : i32
    %c0_i32_1 = arith.constant 0 : i32
    return %c0_i32, %c0_i32_0 : i32, i32
  }
  func.func @transform_6(%arg0: i32) -> (i32, i32) {
    %c0_i32 = arith.constant 0 : i32
    %c0_i32_0 = arith.constant 0 : i32
    %c0_i32_1 = arith.constant 0 : i32
    return %c0_i32, %c0_i32_0 : i32, i32
  }
  func.func @transform_7(%arg0: i32) -> (i32, i32) {
    %c0_i32 = arith.constant 0 : i32
    %c0_i32_0 = arith.constant 0 : i32
    %c0_i32_1 = arith.constant 0 : i32
    return %c0_i32, %c0_i32_0 : i32, i32
  }
  func.func @transform_8(%arg0: i32) -> (i32, i32) {
    %c0_i32 = arith.constant 0 : i32
    %c0_i32_0 = arith.constant 0 : i32
    %c0_i32_1 = arith.constant 0 : i32
    return %c0_i32, %c0_i32_0 : i32, i32
  }
  func.func @transform_9(%arg0: i32) -> (i32, i32) {
    %c0_i32 = arith.constant 0 : i32
    %c0_i32_0 = arith.constant 0 : i32
    return %c0_i32, %arg0 : i32, i32
  }
}

</mosaic_0001>

<bundles_post_ra>
// kernel: tpu_custom_call.1
= control target key start
LH: loop header
LB: loop body
LE: loop exit
PB: predicated region body
PF: predicated region fallthrough
CT: control target
= control target key end

     0   :  { %s1727_s0 = inlined_call_operand.vmem [shape: f32[2000,32], index: 0, kind: input, shape index: {}]   ;;  %s1728_s1 = inlined_call_operand.vmem [shape: bf16[7,32], index: 1, kind: input, shape index: {}]   ;;  %s1729_s2 = inlined_call_operand.vmem [shape: f32[7,1], index: 2, kind: input, shape index: {}]   ;;  %s1730_s3 = inlined_call_operand.vmem [shape: f32[6,7], index: 3, kind: input, shape index: {}]   ;;  %s1731_s4 = inlined_call_operand.vmem [shape: f32[6,1], index: 4, kind: input, shape index: {}]   ;;  %s1732_s5 = inlined_call_operand.vmem [shape: f32[3,6], index: 5, kind: input, shape index: {}]   ;;  %s1733_s6 = inlined_call_operand.vmem [shape: f32[3,1], index: 6, kind: input, shape index: {}]   ;;  %s1734_s7 = inlined_call_operand.vmem [shape: f32[1,3], index: 7, kind: input, shape index: {}]   ;;  %s1735_s8 = inlined_call_operand.<no memory space> [shape: f32[1,1], index: 8, kind: input, shape index: {}]   ;;  %s1736_s9 = inlined_call_operand.hbm [shape: f32[1,2048], index: 9, kind: output, shape index: {}]  }
   0x1   :  { %v14_v0 = vstv %s1735_s8 }
   0x2   :  { %15 = vst [vmem:[#allocation2] sm:$0x1] %v14_v0 }
   0x3   :  { %16 = vsyncpa [#allocation4], 0 }
   0x4   :  { %18 = vsyncpa [#allocation4 + $0x1], 0  ;;  %s1512_s11 = smov 0   ;;  %s1514_s12 = smov 0  }
   0x5   :  { %s1516_s13 = smov 0   ;;  %s1518_s14 = smov 0  }
   0x6 LB: > { %s1263_s8 = sadd.s32 4294967295, %s1453_s14   ;;  %s1264_s15 = sadd.s32 4294967294, %s1453_s14   ;;  %s1453_s14 = sphi %s1518_s14, %s1742_s14   ;;  %s1449_s13 = sphi %s1516_s13, %s1741_s13   ;;  %s1445_s12 = sphi %s1514_s12, %s1740_s12   ;;  %s1441_s11 = sphi %s1512_s11, %s1739_s11  }
   0x7   : > { %s1535_s16 = sadd.s32 1, %s1453_s14   ;;  %s225_s17 = sadd.s32 1, %s1449_s13 }
   0x8   : > { %s222_s18 = ssub.s32 %s1453_s14, %s1535_s16  ;;  %p235_p0 = scmp.ne.s32.totalorder %s1449_s13, %s1445_s12 }
   0x9   : > { %p223_p1 = scmp.eq.s32.totalorder %s222_s18, 0  ;;  %p236_p2 = scmp.eq.s32.totalorder %s1263_s8, 3 }
   0xa   : > { %p241_p3 = scmp.ne.s32.totalorder %s1445_s12, %s1441_s11  ;;  %p242_p4 = scmp.eq.s32.totalorder %s1264_s15, 3 }
   0xb   : > { %s1545_s19 = scalar_select %p223_p1, %s1449_s13, %s225_s17  }
   0xc   : > { %p1547_p5 = por %p236_p2, %p235_p0  ;;  %p1551_p6 = por %p242_p4, %p241_p3 }
   0xd   : > { %p1267_p7 = scmp.ge.s32.totalorder %s1453_s14, 1  ;;  %p301_p8 = scmp.lt.s32.totalorder %s1453_s14, 5 }
   0xf   : > { %p302_p9 = pnand %p1267_p7, %p301_p8 }
  0x10   : > { %s1557_s22 = sshll.u32 (!%p302_p9), %s1263_s8, 6  ;;  %s338_s29 = sand.u32 (!%p302_p9), 1, %s1445_s12  }
  0x11   : > { %305 = sbr.rel (%p302_p9) target bundleno = 917 (0x395), region = 56  ;;  %p346_p10 = scmp.lt.s32.totalorder (!%p302_p9), %s1557_s22, 249 }
  0x12   : > { %s1203_s18 = scalar_lea.hbm (!%p302_p9), %s1736_s9, %s1557_s22  ;;  %s1191_s23 = scalar_lea.sflag (!%p302_p9), [#allocation4], %s338_s29 }
  0x13   : > { %s1458_s25 = smov (!%p302_p9), [#allocation3]  }
  0x14   : > { %s1397_s26 = sshll.u32 (!%p302_p9), %s1458_s25, 4  ;;  %s1398_s26 = int_to_ptr.vmem [resolvable:$false] %s1397_s26 }
  0x16   : > { %vm460_vm0 = vcmask 261120   ;;  %v1562_v1 = vld [vmem:[%s1728_s1] sm:$0xf]  ;;  %v1455_v3 = vmov 0   ;;  %s347_s27 = scalar_select %p346_p10, %s1557_s22, 249  ;;  %vm657_vm1 = vcmask 1046528  }
  0x17   : > { %1313 = vmatprep.mubr.msk.bf16.mxu0 %vm460_vm0, %v1562_v1  ;;  %1331 = vmatprep.mubr.msk.bf16.mxu1 %vm460_vm0, %v1562_v1  ;;  %v454_v2 = vld [vmem:[%s1729_s2] sm:$0x7f]  ;;  %vm653_vm2 = vcmask 56320   ;;  %vm827_vm3 = vcmask 1045504   ;;  %vm823_vm4 = vcmask 48128   ;;  %vm1001_vm5 = vcmask 1042432  }
  0x18   : > { %1391 = vset.pattern.permute.xlu0 %v1455_v3  ;;  %1392 = vset.pattern.permute.xlu1 %v1455_v3  ;;  %v647_v4 = vld [vmem:[%s1731_s4] sm:$0x3f]  ;;  %s1270_s30 = sshll.u32 %s347_s27, 3  ;;  %vm997_vm6 = vcmask 23552   ;;  %s1399_s27 = scalar_lea.vmem %s1398_s26, 128 }
  0x19   : > { %457 = vperm.xlu0 %1391, %v454_v2   ;;  %s1579_s15 = scalar_lea.vmem %s1727_s0, %s1270_s30  ;;  %s1268_s30 = sshll.u32 %s338_s29, 2 }
  0x1a   : > { %v387_v5 = vld [vmem:[%s1579_s15 + $0xf0] sm:$0xff]  ;;  %v388_v6 = vld [vmem:[%s1579_s15 + $0xf8] sm:$0xff]  ;;  %v385_v16 = vld [vmem:[%s1579_s15 + $0xe0] sm:$0xff]  ;;  %s340_s10 = scalar_lea.vmem [#allocation3], %s1268_s30 }
  0x1b   : > { %v419_v7 = vld [vmem:[%s1579_s15 + $0x1f0] sm:$0xff]  ;;  %v436_v8 = vpack.c.bf16 %v388_v6, %v387_v5  ;;  %v420_v9 = vld [vmem:[%s1579_s15 + $0x1f8] sm:$0xff]  ;;  %v386_v18 = vld [vmem:[%s1579_s15 + $0xe8] sm:$0xff]  ;;  %s1205_s8 = sshll.u32 %s340_s10, 4  ;;  %s1206_s8 = int_to_ptr.vmem [resolvable:$true] %s1205_s8 }
  0x1c   : > { %v371_v10 = vld [vmem:[%s1579_s15 + $0x70] sm:$0xff]  ;;  %v372_v11 = vld [vmem:[%s1579_s15 + $0x78] sm:$0xff]  ;;  %v452_v12 = vpack.c.bf16 %v420_v9, %v419_v7  ;;  %v417_v19 = vld [vmem:[%s1579_s15 + $0x1e0] sm:$0xff]  ;;  %v435_v22 = vpack.c.bf16 %v386_v18, %v385_v16  ;;  %s1393_s24 = scalar_lea.vmem %s1206_s8, 64  ;;  %p1400_p0 = scmp.lt.s32.totalorder %s1206_s8, %s1398_s26 }
  0x1d   : > { %650 = vperm.xlu0 %1391, %v647_v4   ;;  %v428_v13 = vpack.c.bf16 %v372_v11, %v371_v10  ;;  %v403_v14 = vld [vmem:[%s1579_s15 + $0x170] sm:$0xff]  ;;  %v404_v15 = vld [vmem:[%s1579_s15 + $0x178] sm:$0xff]  ;;  %1333 = vmatprep.subr.msk.bf16.mxu0 %vm460_vm0, %v436_v8  ;;  %v418_v20 = vld [vmem:[%s1579_s15 + $0x1e8] sm:$0xff]  ;;  %p1394_p11 = scmp.ne.s32.totalorder %s1206_s8, %s1393_s24  ;;  %p1401_p1 = scmp.lt.s32.totalorder %s1399_s27, %s1393_s24 }
  0x1e   : > { %v444_v17 = vpack.c.bf16 %v404_v15, %v403_v14  ;;  %1341 = vmatprep.subr.msk.bf16.mxu1 %vm460_vm0, %v452_v12  ;;  %v451_v23 = vpack.c.bf16 %v418_v20, %v417_v19  ;;  %v369_v24 = vld [vmem:[%s1579_s15 + $0x60] sm:$0xff]  ;;  %v370_v25 = vld [vmem:[%s1579_s15 + $0x68] sm:$0xff]  ;;  %v383_v31 = vld [vmem:[%s1579_s15 + $0xd0] sm:$0xff] }
  0x1f   : > { %v486_v21 = vsel %vm460_vm0, %v428_v13, 0  ;;  %v401_v26 = vld [vmem:[%s1579_s15 + $0x160] sm:$0xff]  ;;  %v402_v28 = vld [vmem:[%s1579_s15 + $0x168] sm:$0xff]  ;;  %v427_v29 = vpack.c.bf16 %v370_v25, %v369_v24  ;;  %v384_v32 = vld [vmem:[%s1579_s15 + $0xd8] sm:$0xff]  ;;  %p1395_p12 = pnand %p1394_p11, %p1547_p5  ;;  %p1402_p2 = por %p1401_p1, %p1400_p0 }
  0x20   : > { %1298 = vmatpush3.bf16.xpose.msra.mxu0 %v486_v21  ;;  %v534_v27 = vsel %vm460_vm0, %v444_v17, 0  ;;  %v443_v30 = vpack.c.bf16 %v402_v28, %v401_v26  ;;  %v415_v33 = vld [vmem:[%s1579_s15 + $0x1d0] sm:$0xff]  ;;  %v416_v34 = vld [vmem:[%s1579_s15 + $0x1d8] sm:$0xff]  ;;  %v434_v36 = vpack.c.bf16 %v384_v32, %v383_v31  ;;  %v381_v45 = vld [vmem:[%s1579_s15 + $0xc0] sm:$0xff] }
  0x21   : > { %1316 = vmatpush3.bf16.xpose.msra.mxu1 %v534_v27  ;;  %1334 = vmatprep.subr.msk.bf16.mxu0 %vm460_vm0, %v435_v22  ;;  %v483_v35 = vsel %vm460_vm0, %v427_v29, 0  ;;  %v450_v38 = vpack.c.bf16 %v416_v34, %v415_v33  ;;  %v367_v39 = vld [vmem:[%s1579_s15 + $0x50] sm:$0xff]  ;;  %v368_v40 = vld [vmem:[%s1579_s15 + $0x58] sm:$0xff]  ;;  %v382_v46 = vld [vmem:[%s1579_s15 + $0xc8] sm:$0xff]  ;;  %p1396_p13 = pneg %p1395_p12 }
  0x22   : > { %1342 = vmatprep.subr.msk.bf16.mxu1 %vm460_vm0, %v451_v23  ;;  %v531_v37 = vsel %vm460_vm0, %v443_v30, 0  ;;  %v399_v41 = vld [vmem:[%s1579_s15 + $0x150] sm:$0xff]  ;;  %v400_v42 = vld [vmem:[%s1579_s15 + $0x158] sm:$0xff]  ;;  %v426_v43 = vpack.c.bf16 %v368_v40, %v367_v39  ;;  %v413_v47 = vld [vmem:[%s1579_s15 + $0x1c0] sm:$0xff]  ;;  %v433_v50 = vpack.c.bf16 %v382_v46, %v381_v45 }
  0x23   : > { %v442_v44 = vpack.c.bf16 %v400_v42, %v399_v41  ;;  %v414_v48 = vld [vmem:[%s1579_s15 + $0x1c8] sm:$0xff]  ;;  %v365_v53 = vld [vmem:[%s1579_s15 + $0x40] sm:$0xff]  ;;  %v379_v59 = vld [vmem:[%s1579_s15 + $0xb0] sm:$0xff]  ;;  %p1403_p3 = pnand %p1402_p2, %p1396_p13 }
  0x24   : > { %v480_v49 = vsel %vm460_vm0, %v426_v43, 0  ;;  %v449_v52 = vpack.c.bf16 %v414_v48, %v413_v47  ;;  %v366_v54 = vld [vmem:[%s1579_s15 + $0x48] sm:$0xff]  ;;  %v397_v55 = vld [vmem:[%s1579_s15 + $0x140] sm:$0xff]  ;;  %v380_v60 = vld [vmem:[%s1579_s15 + $0xb8] sm:$0xff] }
  0x25   : > { %v528_v51 = vsel %vm460_vm0, %v442_v44, 0  ;;  %v398_v56 = vld [vmem:[%s1579_s15 + $0x148] sm:$0xff]  ;;  %v425_v57 = vpack.c.bf16 %v366_v54, %v365_v53  ;;  %v411_v61 = vld [vmem:[%s1579_s15 + $0x1b0] sm:$0xff]  ;;  %v412_v62 = vld [vmem:[%s1579_s15 + $0x1b8] sm:$0xff]  ;;  %v432_v0 = vpack.c.bf16 %v380_v60, %v379_v59  ;;  %v1456_v54 = vmov 0.0  }
  0x26   : > { %v441_v58 = vpack.c.bf16 %v398_v56, %v397_v55  ;;  %v448_v3 = vpack.c.bf16 %v412_v62, %v411_v61  ;;  %v363_v4 = vld [vmem:[%s1579_s15 + $0x30] sm:$0xff]  ;;  %v364_v5 = vld [vmem:[%s1579_s15 + $0x38] sm:$0xff]  ;;  %v377_v10 = vld [vmem:[%s1579_s15 + $0xa0] sm:$0xff] }
  0x27   : > { %v477_v63 = vsel %vm460_vm0, %v425_v57, 0  ;;  %v395_v6 = vld [vmem:[%s1579_s15 + $0x130] sm:$0xff]  ;;  %v396_v7 = vld [vmem:[%s1579_s15 + $0x138] sm:$0xff]  ;;  %v424_v8 = vpack.c.bf16 %v364_v5, %v363_v4  ;;  %v378_v11 = vld [vmem:[%s1579_s15 + $0xa8] sm:$0xff] }
  0x28   : > { %1300 = vmatpush3.bf16.xpose.msra.mxu0 %v483_v35  ;;  %v525_v2 = vsel %vm460_vm0, %v441_v58, 0  ;;  %v440_v9 = vpack.c.bf16 %v396_v7, %v395_v6  ;;  %v409_v12 = vld [vmem:[%s1579_s15 + $0x1a0] sm:$0xff]  ;;  %v410_v13 = vld [vmem:[%s1579_s15 + $0x1a8] sm:$0xff]  ;;  %v431_v15 = vpack.c.bf16 %v378_v11, %v377_v10  ;;  %v375_v24 = vld [vmem:[%s1579_s15 + $0x90] sm:$0xff] }
  0x29   : > { %1318 = vmatpush3.bf16.xpose.msra.mxu1 %v531_v37  ;;  %1335 = vmatprep.subr.msk.bf16.mxu0 %vm460_vm0, %v434_v36  ;;  %v474_v14 = vsel %vm460_vm0, %v424_v8, 0  ;;  %v447_v17 = vpack.c.bf16 %v410_v13, %v409_v12  ;;  %v361_v18 = vld [vmem:[%s1579_s15 + $0x20] sm:$0xff]  ;;  %v362_v19 = vld [vmem:[%s1579_s15 + $0x28] sm:$0xff]  ;;  %v376_v25 = vld [vmem:[%s1579_s15 + $0x98] sm:$0xff] }
  0x2a   : > { %1343 = vmatprep.subr.msk.bf16.mxu1 %vm460_vm0, %v450_v38  ;;  %v522_v16 = vsel %vm460_vm0, %v440_v9, 0  ;;  %v393_v20 = vld [vmem:[%s1579_s15 + $0x120] sm:$0xff]  ;;  %v394_v21 = vld [vmem:[%s1579_s15 + $0x128] sm:$0xff]  ;;  %v423_v22 = vpack.c.bf16 %v362_v19, %v361_v18  ;;  %v407_v26 = vld [vmem:[%s1579_s15 + $0x190] sm:$0xff]  ;;  %v430_v29 = vpack.c.bf16 %v376_v25, %v375_v24 }
  0x2b   : > { %v439_v23 = vpack.c.bf16 %v394_v21, %v393_v20  ;;  %v408_v27 = vld [vmem:[%s1579_s15 + $0x198] sm:$0xff]  ;;  %v359_v32 = vld [vmem:[%s1579_s15 + $0x10] sm:$0xff]  ;;  %v373_v38 = vld [vmem:[%s1579_s15 + $0x80] sm:$0xff] }
  0x2c   : > { %v471_v28 = vsel %vm460_vm0, %v423_v22, 0  ;;  %v446_v31 = vpack.c.bf16 %v408_v27, %v407_v26  ;;  %v360_v33 = vld [vmem:[%s1579_s15 + $0x18] sm:$0xff]  ;;  %v391_v34 = vld [vmem:[%s1579_s15 + $0x110] sm:$0xff]  ;;  %v374_v39 = vld [vmem:[%s1579_s15 + $0x88] sm:$0xff] }
  0x2d   : > { %v519_v30 = vsel %vm460_vm0, %v439_v23, 0  ;;  %v392_v35 = vld [vmem:[%s1579_s15 + $0x118] sm:$0xff]  ;;  %v422_v36 = vpack.c.bf16 %v360_v33, %v359_v32  ;;  %v405_v40 = vld [vmem:[%s1579_s15 + $0x180] sm:$0xff]  ;;  %v406_v41 = vld [vmem:[%s1579_s15 + $0x188] sm:$0xff]  ;;  %v429_v43 = vpack.c.bf16 %v374_v39, %v373_v38  ;;  %v993_v39 = vlaneseq }
  0x2e   : > { %v438_v37 = vpack.c.bf16 %v392_v35, %v391_v34  ;;  %v445_v45 = vpack.c.bf16 %v406_v41, %v405_v40  ;;  %v357_v46 = vld [vmem:[%s1579_s15] sm:$0xff]  ;;  %v358_v47 = vld [vmem:[%s1579_s15 + $0x8] sm:$0xff]  ;;  %v1457_v41 = vmov 1966171168  }
  0x2f   : > { %v468_v42 = vsel %vm460_vm0, %v422_v36, 0  ;;  %v389_v48 = vld [vmem:[%s1579_s15 + $0x100] sm:$0xff]  ;;  %v994_v40 = vshrl.u32 %v993_v39, 7  ;;  %vm1187_vm7 = vcmp.lt.s32.totalorder %v993_v39, 512 }
  0x30   : > { %1302 = vmatpush3.bf16.xpose.msra.mxu0 %v480_v49  ;;  %v516_v44 = vsel %vm460_vm0, %v438_v37, 0  ;;  %v390_v49 = vld [vmem:[%s1579_s15 + $0x108] sm:$0xff]  ;;  %v817_v9 = vld [vmem:[%s1733_s6] sm:$0x7] }
  0x31   : > { %1320 = vmatpush3.bf16.xpose.msra.mxu1 %v528_v51  ;;  %1336 = vmatprep.subr.msk.bf16.mxu0 %vm460_vm0, %v433_v50  ;;  %v421_v50 = vpack.c.bf16 %v358_v47, %v357_v46  ;;  %v437_v51 = vpack.c.bf16 %v390_v49, %v389_v48  ;;  %v987_v10 = vld [vmem:[#allocation2] sm:$0x1] }
  0x32   : > { %1344 = vmatprep.subr.msk.bf16.mxu1 %vm460_vm0, %v449_v52  ;;  %820 = vperm.xlu1 %1392, %v817_v9   ;;  %v816_v23 = vld [vmem:[%s1732_s5] sm:$0x7] }
  0x33   : > { %v465_v52 = vsel %vm460_vm0, %v421_v50, 0  ;;  %v513_v53 = vsel %vm460_vm0, %v437_v51, 0  ;;  %v986_v37 = vld [vmem:[%s1734_s7] sm:$0x1] }
  0x36   : > { %990 = vperm.xlu1 %1392, %v987_v10  }
  0x38   : > { %1304 = vmatpush3.bf16.xpose.msra.mxu0 %v477_v63 }
  0x39   : > { %1322 = vmatpush3.bf16.xpose.msra.mxu1 %v525_v2  ;;  %1337 = vmatprep.subr.msk.bf16.mxu0 %vm460_vm0, %v432_v0 }
  0x3a   : > { %1345 = vmatprep.subr.msk.bf16.mxu1 %vm460_vm0, %v448_v3 }
  0x40   : > { %1306 = vmatpush3.bf16.xpose.msra.mxu0 %v474_v14 }
  0x41   : > { %1324 = vmatpush3.bf16.xpose.msra.mxu1 %v522_v16  ;;  %1338 = vmatprep.subr.msk.bf16.mxu0 %vm460_vm0, %v431_v15 }
  0x42   : > { %1346 = vmatprep.subr.msk.bf16.mxu1 %vm460_vm0, %v447_v17 }
  0x48   : > { %1308 = vmatpush3.bf16.xpose.msra.mxu0 %v471_v28 }
  0x49   : > { %1326 = vmatpush3.bf16.xpose.msra.mxu1 %v519_v30  ;;  %1339 = vmatprep.subr.msk.bf16.mxu0 %vm460_vm0, %v430_v29 }
  0x4a   : > { %1347 = vmatprep.subr.msk.bf16.mxu1 %vm460_vm0, %v446_v31 }
  0x50   : > { %1310 = vmatpush3.bf16.xpose.msra.mxu0 %v468_v42  ;;  %v1163_v42 = vunpack.c.l.s4 %v1457_v41 }
  0x51   : > { %1328 = vmatpush3.bf16.xpose.msra.mxu1 %v516_v44  ;;  %1340 = vmatprep.subr.msk.bf16.mxu0 %vm460_vm0, %v429_v43  ;;  %v995_v43 = vsub.s32 0, %v994_v40 }
  0x52   : > { %1348 = vmatprep.subr.msk.bf16.mxu1 %vm460_vm0, %v445_v45  ;;  %v1164_v45 = vunpack.c.0.s8 %v1163_v42 }
  0x54   : > { %v1167_v50 = vsub.s32 %v1164_v45, %v994_v40 }
  0x58   : > { %1312 = vmatpush3.bf16.xpose.msra.mxu0 %v465_v52 }
  0x59   : > { %1330 = vmatpush3.bf16.xpose.msra.mxu1 %v513_v53 }
  0x5f   : > { %1314 = vmatmul.mubr.msk.bf16.vlgmr.msra.gmra.mxu0 %vm460_vm0, %v1562_v1 }
  0x60   : > { %1332 = vmatmul.mubr.msk.bf16.vlgmr.msra.gmra.mxu1 %vm460_vm0, %v1562_v1  ;;  %734 = vmatprep.mubr.f32.mxu0 %v1456_v54  ;;  %v646_v1 = vld [vmem:[%s1730_s3] sm:$0x3f] }
  0x61   : > { %805 = vmatprep.mubr.f32.mxu1 %v1456_v54 }
  0x94   : > { %v458_v56 = vpop.permute.xlu0 %457 }
  0x98   : > { %v651_v12 = vpop.permute.xlu0 %650 }
  0xad   : > { %v821_v27 = vpop.permute.xlu1 %820 }
  0xb1   : > { %v991_v44 = vpop.permute.xlu1 %990 }
  0xb2   : > { %v996_v47 = vrot.slane %v991_v44, %v995_v43 }
 0x11f   : > { %v594_v55 = vpop.f32.mrf.mxu0 }
 0x120   : > { %v635_v57 = vpop.f32.mrf.mxu1  ;;  %v595_v58 = vadd.f32 %v594_v55, %v458_v56 }
 0x121   : > { %v596_v59 = vpop.f32.mrf.mxu0  ;;  %v636_v60 = vadd.f32 %v635_v57, %v458_v56 }
 0x122   : > { %v597_v61 = vadd.f32 %v596_v59, %v458_v56  ;;  %v637_v62 = vpop.f32.mrf.mxu1  ;;  %v642_v4 = vmax.f32 %v595_v58, 0.0 }
 0x123   : > { %v638_v63 = vadd.f32 %v637_v62, %v458_v56  ;;  %v598_v0 = vpop.f32.mrf.mxu0  ;;  %v644_v7 = vmax.f32 %v636_v60, 0.0 }
 0x124   : > { %v643_v2 = vmax.f32 %v597_v61, 0.0  ;;  %v639_v3 = vpop.f32.mrf.mxu1 }
 0x125   : > { %v645_v5 = vmax.f32 %v638_v63, 0.0  ;;  %v599_v6 = vpop.f32.mrf.mxu0 }
 0x126   : > { %v640_v8 = vpop.f32.mrf.mxu1  ;;  %1273 = vmatprep.subr.msk.mxu0 %vm657_vm1, %v643_v2 }
 0x127   : > { %1276 = vmatprep.subr.msk.mxu1 %vm657_vm1, %v645_v5  ;;  %1274 = vmatpush1.msk.msra.mxu0 %vm657_vm1, %v642_v4 }
 0x128   : > { %1277 = vmatpush1.msk.msra.mxu1 %vm657_vm1, %v644_v7  ;;  %1275 = vmatmul.mubr.msk.f32.vlgmr.msra.gmra.mxu0 %vm653_vm2, %v646_v1 }
 0x129   : > { %1278 = vmatmul.mubr.msk.f32.vlgmr.msra.gmra.mxu1 %vm653_vm2, %v646_v1  ;;  %904 = vmatprep.mubr.f32.mxu0 %v1456_v54 }
 0x12a   : > { %975 = vmatprep.mubr.f32.mxu1 %v1456_v54 }
 0x1e8   : > { %v736_v11 = vpop.f32.mrf.mxu0 }
 0x1e9   : > { %v807_v13 = vpop.f32.mrf.mxu1  ;;  %v737_v14 = vadd.f32 %v736_v11, %v651_v12 }
 0x1ea   : > { %v738_v15 = vpop.f32.mrf.mxu0  ;;  %v808_v16 = vadd.f32 %v807_v13, %v651_v12 }
 0x1eb   : > { %v739_v17 = vadd.f32 %v738_v15, %v651_v12  ;;  %v809_v18 = vpop.f32.mrf.mxu1  ;;  %v812_v21 = vmax.f32 %v737_v14, 0.0 }
 0x1ec   : > { %v810_v19 = vadd.f32 %v809_v18, %v651_v12  ;;  %v814_v24 = vmax.f32 %v808_v16, 0.0 }
 0x1ed   : > { %v813_v20 = vmax.f32 %v739_v17, 0.0 }
 0x1ee   : > { %v815_v22 = vmax.f32 %v810_v19, 0.0 }
 0x1ef   : > { %1279 = vmatprep.subr.msk.mxu0 %vm827_vm3, %v813_v20 }
 0x1f0   : > { %1282 = vmatprep.subr.msk.mxu1 %vm827_vm3, %v815_v22  ;;  %1280 = vmatpush1.msk.msra.mxu0 %vm827_vm3, %v812_v21 }
 0x1f1   : > { %1283 = vmatpush1.msk.msra.mxu1 %vm827_vm3, %v814_v24  ;;  %1281 = vmatmul.mubr.msk.f32.vlgmr.msra.gmra.mxu0 %vm823_vm4, %v816_v23 }
 0x1f2   : > { %1284 = vmatmul.mubr.msk.f32.vlgmr.msra.gmra.mxu1 %vm823_vm4, %v816_v23  ;;  %1078 = vmatprep.mubr.f32.mxu0 %v1456_v54 }
 0x1f3   : > { %1149 = vmatprep.mubr.f32.mxu1 %v1456_v54 }
 0x2b1   : > { %v906_v25 = vpop.f32.mrf.mxu0 }
 0x2b2   : > { %v977_v26 = vpop.f32.mrf.mxu1  ;;  %v907_v28 = vadd.f32 %v906_v25, %v821_v27 }
 0x2b3   : > { %v908_v29 = vpop.f32.mrf.mxu0  ;;  %v978_v30 = vadd.f32 %v977_v26, %v821_v27 }
 0x2b4   : > { %v909_v31 = vadd.f32 %v908_v29, %v821_v27  ;;  %v979_v32 = vpop.f32.mrf.mxu1  ;;  %v982_v35 = vmax.f32 %v907_v28, 0.0 }
 0x2b5   : > { %v980_v33 = vadd.f32 %v979_v32, %v821_v27  ;;  %v984_v38 = vmax.f32 %v978_v30, 0.0 }
 0x2b6   : > { %v983_v34 = vmax.f32 %v909_v31, 0.0 }
 0x2b7   : > { %v985_v36 = vmax.f32 %v980_v33, 0.0 }
 0x2b8   : > { %1285 = vmatprep.subr.msk.mxu0 %vm1001_vm5, %v983_v34 }
 0x2b9   : > { %1288 = vmatprep.subr.msk.mxu1 %vm1001_vm5, %v985_v36  ;;  %1286 = vmatpush1.msk.msra.mxu0 %vm1001_vm5, %v982_v35 }
 0x2ba   : > { %1289 = vmatpush1.msk.msra.mxu1 %vm1001_vm5, %v984_v38  ;;  %1287 = vmatmul.mubr.msk.f32.vlgmr.msra.gmra.mxu0 %vm997_vm6, %v986_v37 }
 0x2bb   : > { %1290 = vmatmul.mubr.msk.f32.vlgmr.msra.gmra.mxu1 %vm997_vm6, %v986_v37 }
 0x37a   : > { %v1080_v46 = vpop.f32.mrf.mxu0 }
 0x37b   : > { %v1151_v48 = vpop.f32.mrf.mxu1  ;;  %v1081_v51 = vadd.f32 %v1080_v46, %v996_v47 }
 0x37c   : > { %v1082_v49 = vpop.f32.mrf.mxu0  ;;  %v1152_v54 = vadd.f32 %v1151_v48, %v996_v47 }
 0x37d   : > { %v1083_v52 = vadd.f32 %v1082_v49, %v996_v47  ;;  %v1153_v53 = vpop.f32.mrf.mxu1 }
 0x37e   : > { %v1154_v55 = vadd.f32 %v1153_v53, %v996_v47 }
 0x37f   : > { %v1160_v56 = vcombine.low %v1081_v51, %v1083_v52 }
 0x380   : > { %v1161_v57 = vcombine.low %v1152_v54, %v1154_v55 }
 0x381   : > { %v1168_v58 = vrot.slane %v1160_v56, %v1167_v50 }
 0x382   : > { %v1175_v59 = vrot.slane %v1161_v57, %v1167_v50 }
 0x384   : > { %v1176_v60 = vcombine.low %v1168_v58, %v1175_v59 }
 0x386   : > { %v1183_v61 = vrot.slane %v1176_v60, %v1167_v50 }
 0x388   : > { %1189 = vst.msk [vmem:[%s340_s10] sm:$0xf] %vm1187_vm7, %v1183_v61 }
 0x389   : > { %1406 = shalt.err (!%p1403_p3)
}
 0x38a   : > { %s1407_s28 = scalar_lea.hbm %s1203_s18, 64  ;;  %s1411_s30 = scalar_lea.hbm %s1736_s9, 256 }
 0x38b   : > { %p1408_p4 = scmp.ne.s32.totalorder %s1203_s18, %s1407_s28  ;;  %p1412_p9 = scmp.lt.s32.totalorder %s1203_s18, %s1736_s9 }
 0x38c   : > { %p1413_p10 = scmp.lt.s32.totalorder %s1411_s30, %s1407_s28 }
 0x38d   : > { %p1409_p7 = pnand %p1408_p4, %p1547_p5 }
 0x38e   : > { %p1414_p11 = por %p1413_p10, %p1412_p9 }
 0x38f   : > { %p1410_p8 = pneg %p1409_p7 }
 0x391   : > { %p1415_p12 = pnand %p1414_p11, %p1410_p8 }
 0x393   : > { %1418 = shalt.err (!%p1415_p12)
}
 0x394   : > { %1349 = dma.vmem_to_hbm [thread:$0]  (%p1547_p5), %s1206_s8, 64, %s1203_s18, %s1191_s23  }
 0x395 PF: > { %p1355_p13 = scmp.ge.s32.totalorder %s1453_s14, 2  ;;  %s1217_s17 = sand.u32 1, %s1441_s11  }
 0x396   : > { %s1218_s24 = scalar_lea.sflag [#allocation4], %s1217_s17 }
 0x397   : > { %p1352_p0 = pnand %p1355_p13, %p1551_p6 }
 0x399   : > { %p1353_p1 = pneg %p1352_p0 }
 0x39b   : > { %1436 = dma.done.wait (%p1353_p1), %s1218_s24, 64  }
 0x39c   : > { %1438 = vsyncadd (%p1353_p1), %s1218_s24, 4294967232  ;;  %p21_p2 = scmp.ge.s32.totalorder %s1535_s16, 6   ;;  %s1739_s11 = smov %s1445_s12 }
 0x39d   : > { %s1740_s12 = smov %s1449_s13  ;;  %s1741_s13 = smov %s1545_s19 }
 0x39e   : > { %s1742_s14 = smov %s1535_s16  ;;  %23 = sbr.rel (!%p21_p2) target bundleno = 6 (0x6), region = 91 }
 0x3a3   :  { %1223 = vsyncpa [#allocation4], 1 }
 0x3a4   :  { %1225 = vsyncpa [#allocation4 + $0x1], 1 }

</bundles_post_ra>
